<compile_context>
chip_gen: v7x
topology: tpu7x:2x2x1
jax: 0.10.0
libtpu: 0.0.40
codegen_flags: <defaults>
</compile_context>

<pallas_src>
import jax
import jax.numpy as jnp
from jax.experimental import pallas as pl
from jax.experimental.pallas import tpu as pltpu


def _round_up(x: int, m: int) -> int:
    return ((x + m - 1) // m) * m


def _patch_embed_kernel(x_ref, w_ref, b_ref, o_ref):
    # x_ref: (tm, K) bf16, w_ref: (K, E) bf16, b_ref: (1, E) f32, o_ref: (tm, E)
    acc = jnp.dot(x_ref[...], w_ref[...], preferred_element_type=jnp.float32)
    o_ref[...] = (acc + b_ref[...]).astype(o_ref.dtype)


def _pick_tm(M: int, K_pad: int, E_pad: int, out_itemsize: int) -> int:
    """Largest MXU-friendly row tile whose double-buffered VMEM footprint fits."""
    budget = 12 * 1024 * 1024  # stay under v5e's 16 MiB default scoped limit
    for cand in (512, 256, 128, 64, 32, 16):
        tm = min(cand, _round_up(M, 16))
        vmem = (2 * tm * K_pad * 2          # LHS tiles, bf16, double-buffered
                + 2 * K_pad * E_pad * 2     # RHS (resident, but 2 bufs allocated)
                + 2 * E_pad * 4             # bias
                + 2 * tm * E_pad * out_itemsize)
        if vmem <= budget:
            return tm
    return 16


def patch_embed_matmul(patches, weight, bias, *, out_dtype):
    """patches: (M, K), weight: (K, E), bias: (E,) -> (M, E) in out_dtype.

    Pads M/K/E to MXU/lane-friendly multiples, runs a bf16 MXU matmul with f32
    accumulation and f32 bias epilogue, then slices the padding back off.
    """
    M, K = patches.shape
    E = weight.shape[1]
    out_itemsize = jnp.dtype(out_dtype).itemsize

    # ---- padding / tiling targets ---------------------------------------
    K_pad = _round_up(K, 128)            # lane dim of LHS / sublane dim of RHS
    E_pad = _round_up(E, 128)            # lane-dense output -> unmasked stores
    tm = _pick_tm(M, K_pad, E_pad, out_itemsize)
    M_pad = _round_up(M, tm)

    # ---- bf16 operands (f32 accumulate in-kernel), zero padding ----------
    lhs = patches.astype(jnp.bfloat16)
    rhs = weight.astype(jnp.bfloat16)
    if (M_pad, K_pad) != (M, K):
        lhs = jnp.pad(lhs, ((0, M_pad - M), (0, K_pad - K)))
    if (K_pad, E_pad) != (K, E):
        rhs = jnp.pad(rhs, ((0, K_pad - K), (0, E_pad - E)))
    bias2d = jnp.pad(bias.astype(jnp.float32).reshape(1, E),
                     ((0, 0), (0, E_pad - E)))

    cost = pl.CostEstimate(
        flops=2 * M_pad * K_pad * E_pad,
        transcendentals=0,
        bytes_accessed=(M_pad * K_pad * 2            # bf16 patches
                        + K_pad * E_pad * 2          # bf16 weight
                        + E_pad * 4                  # f32 bias
                        + M_pad * E_pad * out_itemsize),
    )

    out = pl.pallas_call(
        _patch_embed_kernel,
        out_shape=jax.ShapeDtypeStruct((M_pad, E_pad), out_dtype),
        grid_spec=pltpu.PrefetchScalarGridSpec(
            num_scalar_prefetch=0,
            grid=(M_pad // tm,),
            in_specs=[
                pl.BlockSpec((tm, K_pad), lambda i: (i, 0)),
                pl.BlockSpec((K_pad, E_pad), lambda i: (0, 0)),  # resident
                pl.BlockSpec((1, E_pad), lambda i: (0, 0)),      # resident
            ],
            out_specs=pl.BlockSpec((tm, E_pad), lambda i: (i, 0)),
        ),
        compiler_params=pltpu.CompilerParams(
            dimension_semantics=("parallel",),
            # Let XLA fuse the patch rearrange / bf16 cast / pad into the LHS
            # operand instead of materializing it in HBM first.
            allow_input_fusion=[True, False, False],
        ),
        cost_estimate=cost,
    )(lhs, rhs, bias2d)

    return out[:M, :E]


def patch_embed_forward(x_nchw, conv_weight, conv_bias, patch_size, *, flatten=True):
    """PatchEmbed.forward.

    x_nchw:      (B, C, H, W)            -- same NCHW layout as PyTorch
    conv_weight: (embed_dim, C, P, P)    -- nn.Conv2d weight layout
    conv_bias:   (embed_dim,)
    returns:     (B, N, embed_dim) if flatten else (B, embed_dim, H//P, W//P)
    """
    B, C, H, W = x_nchw.shape
    P = patch_size
    E = conv_weight.shape[0]
    Hp, Wp = H // P, W // P
    N = Hp * Wp

    # Layout glue: extract non-overlapping patches -> (B*N, C*P*P)
    patches = x_nchw.reshape(B, C, Hp, P, Wp, P)
    patches = patches.transpose(0, 2, 4, 1, 3, 5)      # (B, Hp, Wp, C, P, P)
    patches = patches.reshape(B * N, C * P * P)

    # Layout glue: conv weight (E, C, P, P) -> (C*P*P, E) so conv == patches @ W
    w = conv_weight.reshape(E, C * P * P).T

    out = patch_embed_matmul(patches, w, conv_bias, out_dtype=x_nchw.dtype)
    out = out.reshape(B, N, E)                          # flatten(2).transpose(1,2)

    if not flatten:
        out = out.transpose(0, 2, 1).reshape(B, E, Hp, Wp)
    # norm is nn.Identity() (norm_layer=None default) -> no-op
    return out


if __name__ == "__main__":
    # Small shapes consistent with the module's forward:
    # batch=2, in_chans=4, spatial=16, patch_size=8, embed_dim=32
    B, C, H, W = 2, 4, 16, 16
    P = 8
    E = 32

    key = jax.random.PRNGKey(0)
    kx, kw, kb = jax.random.split(key, 3)
    x = jax.random.normal(kx, (B, C, H, W), dtype=jnp.float32)
    conv_weight = jax.random.normal(kw, (E, C, P, P), dtype=jnp.float32) * 0.02
    conv_bias = jax.random.normal(kb, (E,), dtype=jnp.float32) * 0.02

    out = patch_embed_forward(x, conv_weight, conv_bias, P, flatten=True)
    out = jax.block_until_ready(out)

    # Reference check against f32 lax conv (same semantics as nn.Conv2d stride=P).
    # Tolerance accounts for bf16 operand quantization in the kernel's MXU path.
    ref = jax.lax.conv_general_dilated(
        x, conv_weight, window_strides=(P, P), padding="VALID",
        dimension_numbers=("NCHW", "OIHW", "NCHW"),
    ) + conv_bias.reshape(1, E, 1, 1)
    ref = ref.reshape(B, E, -1).transpose(0, 2, 1)

    assert out.shape == (B, (H // P) * (W // P), E)
    assert jnp.allclose(out, ref, atol=1e-2, rtol=1e-2)

    print("KERNEL_OK")
</pallas_src>

<mosaic_0001>
module attributes {stable_mosaic.version = 11 : i64} {
  func.func @_patch_embed_kernel(%arg0: i32, %arg1: memref<16x256xbf16, #tpu.memory_space<vmem>>, %arg2: memref<256x128xbf16, #tpu.memory_space<vmem>>, %arg3: memref<1x128xf32, #tpu.memory_space<vmem>>, %arg4: memref<16x128xf32, #tpu.memory_space<vmem>>) attributes {dimension_semantics = [#tpu.dimension_semantics<parallel>], iteration_bounds = array<i64: 1>, scalar_prefetch = 0 : i64, scratch_operands = 0 : i64, tpu.core_type = #tpu.core_type<tc>, window_params = [{transform_indices = @transform_0, window_bounds = array<i64: 16, 256>}, {pipeline_mode = #tpu.pipeline_mode<synchronous>, transform_indices = @transform_1, window_bounds = array<i64: 256, 128>}, {pipeline_mode = #tpu.pipeline_mode<synchronous>, transform_indices = @transform_2, window_bounds = array<i64: 1, 128>}, {transform_indices = @transform_3, window_bounds = array<i64: 16, 128>}]} {
    %c0 = arith.constant 0 : index
    %c0_0 = arith.constant 0 : index
    %0 = vector.load %arg1[%c0, %c0_0] : memref<16x256xbf16, #tpu.memory_space<vmem>>, vector<16x256xbf16>
    %c0_1 = arith.constant 0 : index
    %c0_2 = arith.constant 0 : index
    %1 = vector.load %arg2[%c0_1, %c0_2] : memref<256x128xbf16, #tpu.memory_space<vmem>>, vector<256x128xbf16>
    %cst = arith.constant dense<0.000000e+00> : vector<16x128xf32>
    %2 = tpu.matmul %0, %1, %cst {dimension_numbers = #tpu.dot_dimension_numbers<[1], [0], [0], [1], [0, 0, 1, 1], [], []>} : vector<16x256xbf16>, vector<256x128xbf16>, vector<16x128xf32> -> vector<16x128xf32>
    %c0_3 = arith.constant 0 : index
    %c0_4 = arith.constant 0 : index
    %3 = vector.load %arg3[%c0_3, %c0_4] : memref<1x128xf32, #tpu.memory_space<vmem>>, vector<1x128xf32>
    %4 = vector.broadcast %3 : vector<1x128xf32> to vector<16x128xf32>
    %5 = arith.addf %2, %4 : vector<16x128xf32>
    %c0_5 = arith.constant 0 : index
    %c0_6 = arith.constant 0 : index
    %6 = vector.load %arg4[%c0_5, %c0_6] : memref<16x128xf32, #tpu.memory_space<vmem>>, vector<16x128xf32>
    tpu.vector_store %arg4[%c0_5, %c0_6], %5 {strides = array<i32>} : memref<16x128xf32, #tpu.memory_space<vmem>>, vector<16x128xf32>,
    return
  }
  func.func @transform_0(%arg0: i32) -> (i32, i32) {
    %c0_i32 = arith.constant 0 : i32
    %c0_i32_0 = arith.constant 0 : i32
    return %arg0, %c0_i32 : i32, i32
  }
  func.func @transform_1(%arg0: i32) -> (i32, i32) {
    %c0_i32 = arith.constant 0 : i32
    %c0_i32_0 = arith.constant 0 : i32
    %c0_i32_1 = arith.constant 0 : i32
    return %c0_i32, %c0_i32_0 : i32, i32
  }
  func.func @transform_2(%arg0: i32) -> (i32, i32) {
    %c0_i32 = arith.constant 0 : i32
    %c0_i32_0 = arith.constant 0 : i32
    %c0_i32_1 = arith.constant 0 : i32
    return %c0_i32, %c0_i32_0 : i32, i32
  }
  func.func @transform_3(%arg0: i32) -> (i32, i32) {
    %c0_i32 = arith.constant 0 : i32
    %c0_i32_0 = arith.constant 0 : i32
    return %arg0, %c0_i32 : i32, i32
  }
}

</mosaic_0001>

<bundles_post_ra>
// kernel: tpu_custom_call.1
= control target key start
LH: loop header
LB: loop body
LE: loop exit
PB: predicated region body
PF: predicated region fallthrough
CT: control target
= control target key end

     0   :  { %8 = vsyncpa [#allocation3], 0  ;;  %s463_s0 = inlined_call_operand.hbm [shape: bf16[16,256], index: 0, kind: input, shape index: {}]   ;;  %s464_s1 = inlined_call_operand.hbm [shape: bf16[256,128], index: 1, kind: input, shape index: {}]   ;;  %s465_s2 = inlined_call_operand.vmem [shape: f32[1,128], index: 2, kind: input, shape index: {}]   ;;  %s466_s3 = inlined_call_operand.hbm [shape: f32[16,128], index: 3, kind: output, shape index: {}]  }
   0x1   :  { %9 = vsyncpa [#allocation6], 0 }
   0x2   :  { %10 = vsyncpa [#allocation4], 0  ;;  %s391_s12 = smov [#allocation2]   ;;  %s319_s16 = scalar_lea.hbm %s463_s0, 256 }
   0x3   :  { %s16_s13 = sshll.u32 %s391_s12, 4  ;;  %p320_p0 = scmp.ne.s32.totalorder %s463_s0, %s319_s16  ;;  %s17_s13 = int_to_ptr.vmem [resolvable:$true] %s16_s13 }
   0x4   :  { %p323_p1 = scmp.lt.u32.totalorder %s319_s16, %s463_s0 }
   0x6   :  { %p325_p2 = pnand %p323_p1, %p320_p0 }
   0x8   :  { %328 = shalt.err (!%p325_p2)
}
   0x9   :  { %s329_s21 = scalar_lea.vmem %s17_s13, 256  ;;  %p334_p4 = scmp.lt.s32.totalorder %s17_s13, %s17_s13 }
   0xa   :  { %p330_p3 = scmp.ne.s32.totalorder %s17_s13, %s329_s21  ;;  %p335_p5 = scmp.lt.s32.totalorder %s329_s21, %s329_s21 }
   0xc   :  { %p336_p6 = por %p335_p5, %p334_p4 }
   0xe   :  { %p337_p7 = pnand %p336_p6, %p330_p3 }
  0x10   :  { %340 = shalt.err (!%p337_p7)
}
  0x11   :  { %s392_s22 = smov 128   ;;  %s393_s23 = smov 8  }
  0x12   :  { %22 = dma.hbm_to_vmem [thread:$0]  %s463_s0, 256, %s17_s13, [#allocation3], %s392_s22, %s392_s22, %s393_s23  }
  0x13   :  { %s394_s26 = smov [#allocation5]   ;;  %s341_s30 = scalar_lea.hbm %s464_s1, 2048 }
  0x14   :  { %s28_s27 = sshll.u32 %s394_s26, 4  ;;  %p342_p8 = scmp.ne.s32.totalorder %s464_s1, %s341_s30  ;;  %s29_s27 = int_to_ptr.vmem [resolvable:$true] %s28_s27 }
  0x15   :  { %p345_p9 = scmp.lt.u32.totalorder %s341_s30, %s464_s1 }
  0x17   :  { %p347_p10 = pnand %p345_p9, %p342_p8 }
  0x19   :  { %350 = shalt.err (!%p347_p10)
}
  0x1a   :  { %s351_s8 = scalar_lea.vmem %s29_s27, 2048  ;;  %p356_p12 = scmp.lt.s32.totalorder %s29_s27, %s29_s27 }
  0x1b   :  { %p352_p11 = scmp.ne.s32.totalorder %s29_s27, %s351_s8  ;;  %p357_p13 = scmp.lt.s32.totalorder %s351_s8, %s351_s8 }
  0x1d   :  { %p358_p0 = por %p357_p13, %p356_p12 }
  0x1f   :  { %p359_p1 = pnand %p358_p0, %p352_p11 }
  0x21   :  { %362 = shalt.err (!%p359_p1)
}
  0x22   :  { %s395_s0 = smov 64   ;;  %s396_s9 = smov 4  }
  0x23   :  { %34 = dma.hbm_to_vmem [thread:$0]  %s464_s1, 2048, %s29_s27, [#allocation6], %s395_s0, %s395_s0, %s396_s9  }
  0x24   :  { %385 = dma.done.wait [#allocation3], 256  }
  0x25   :  { %386 = vsyncadd [#allocation3], 4294967040 }
  0x26   :  { %387 = dma.done.wait [#allocation6], 2048  }
  0x27   :  { %388 = vsyncadd [#allocation6], 4294965248  ;;  %v300_v0 = vld [vmem:[#allocation5 + $0x40] sm:$0xff]   ;;  %v302_v2 = vld [vmem:[#allocation5 + $0x48] sm:$0xff]   ;;  %s397_s13 = smov [#allocation7]  }
  0x28   :  { %v301_v1 = vld [vmem:[#allocation5] sm:$0xff]   ;;  %271 = vmatprep.subr.bf16.mxu0 %v300_v0  ;;  %v303_v3 = vld [vmem:[#allocation5 + $0x8] sm:$0xff]   ;;  %v304_v4 = vld [vmem:[#allocation5 + $0x50] sm:$0xff]   ;;  %s239_s14 = sshll.u32 %s397_s13, 4  ;;  %s240_s14 = int_to_ptr.vmem [resolvable:$true] %s239_s14 }
  0x29   :  { %272 = vmatpush3.bf16.msra.mxu0 %v301_v1  ;;  %v305_v5 = vld [vmem:[#allocation5 + $0x10] sm:$0xff]   ;;  %v306_v6 = vld [vmem:[#allocation5 + $0x58] sm:$0xff]   ;;  %v308_v8 = vld [vmem:[#allocation5 + $0x60] sm:$0xff]   ;;  %s363_s15 = scalar_lea.vmem %s240_s14, 256  ;;  %p368_p3 = scmp.lt.s32.totalorder %s240_s14, %s240_s14 }
  0x2a   :  { %273 = vmatprep.subr.bf16.mxu0 %v302_v2  ;;  %v307_v7 = vld [vmem:[#allocation5 + $0x18] sm:$0xff]   ;;  %v309_v9 = vld [vmem:[#allocation5 + $0x20] sm:$0xff]   ;;  %v310_v10 = vld [vmem:[#allocation5 + $0x68] sm:$0xff]   ;;  %p364_p2 = scmp.ne.s32.totalorder %s240_s14, %s363_s15  ;;  %p369_p4 = scmp.lt.s32.totalorder %s363_s15, %s363_s15 }
  0x2b   :  { %v318_v11 = vld [vmem:[#allocation2 + $0x4] ss:$8 sps:$4 sm:$0xff]   ;;  %v311_v12 = vld [vmem:[#allocation5 + $0x28] sm:$0xff]   ;;  %v316_v17 = vld [vmem:[#allocation2] ss:$8 sps:$4 sm:$0xff]  }
  0x2c   :  { %223 = vmatprep.mubr.bf16.mxu0 %v318_v11  ;;  %v312_v13 = vld [vmem:[#allocation5 + $0x70] sm:$0xff]   ;;  %v314_v15 = vld [vmem:[#allocation5 + $0x78] sm:$0xff]   ;;  %p370_p5 = por %p369_p4, %p368_p3 }
  0x2d   :  { %274 = vmatpush3.bf16.msra.mxu0 %v303_v3  ;;  %v313_v14 = vld [vmem:[#allocation5 + $0x30] sm:$0xff]   ;;  %v315_v16 = vld [vmem:[#allocation5 + $0x38] sm:$0xff]  }
  0x2e   :  { %275 = vmatprep.subr.bf16.mxu0 %v304_v4  ;;  %v252_v19 = vld [vmem:[%s465_s2] ss:$0 sm:$0xff]  ;;  %p371_p6 = pnand %p370_p5, %p364_p2 }
  0x31   :  { %276 = vmatpush3.bf16.msra.mxu0 %v305_v5 }
  0x32   :  { %277 = vmatprep.subr.bf16.mxu0 %v306_v6 }
  0x35   :  { %278 = vmatpush3.bf16.msra.mxu0 %v307_v7 }
  0x36   :  { %279 = vmatprep.subr.bf16.mxu0 %v308_v8 }
  0x39   :  { %280 = vmatpush3.bf16.msra.mxu0 %v309_v9 }
  0x3a   :  { %281 = vmatprep.subr.bf16.mxu0 %v310_v10 }
  0x3d   :  { %282 = vmatpush3.bf16.msra.mxu0 %v311_v12 }
  0x3e   :  { %283 = vmatprep.subr.bf16.mxu0 %v312_v13 }
  0x41   :  { %284 = vmatpush3.bf16.msra.mxu0 %v313_v14 }
  0x42   :  { %285 = vmatprep.subr.bf16.mxu0 %v314_v15 }
  0x45   :  { %286 = vmatpush3.bf16.msra.mxu0 %v315_v16 }
  0x48   :  { %224 = vmatmul.mubr.bf16.vlgmr.msra.gmra.mrb[0].mxu0 %v316_v17 }
 0x11b   :  { %v287_v18 = vpop.f32.mrb[0].mxu0 }
 0x11c   :  { %v288_v20 = vpop.f32.mrb[1].mxu0 }
 0x11d   :  { %v289_v21 = vadd.f32 %v288_v20, %v287_v18  ;;  %v290_v22 = vpop.f32.mrb[2].mxu0 }
 0x11e   :  { %v291_v23 = vpop.f32.mrb[3].mxu0 }
 0x11f   :  { %v226_v24 = vadd.f32 %v289_v21, %v252_v19  ;;  %v292_v25 = vadd.f32 %v291_v23, %v290_v22 }
 0x121   :  { %232 = vst [vmem:[#allocation7] sm:$0xff] %v226_v24  ;;  %v229_v26 = vadd.f32 %v292_v25, %v252_v19 }
 0x123   :  { %233 = vst [vmem:[#allocation7 + $0x8] sm:$0xff] %v229_v26 }
 0x124   :  { %374 = shalt.err (!%p371_p6)
}
 0x125   :  { %s375_s17 = scalar_lea.hbm %s466_s3, 256 }
 0x126   :  { %p376_p7 = scmp.ne.s32.totalorder %s466_s3, %s375_s17  ;;  %p379_p8 = scmp.lt.u32.totalorder %s375_s17, %s466_s3 }
 0x128   :  { %p381_p9 = pnand %p379_p8, %p376_p7 }
 0x12a   :  { %384 = shalt.err (!%p381_p9)
}
 0x12b   :  { %245 = dma.vmem_to_hbm [thread:$0]  %s240_s14, 256, %s466_s3, [#allocation4], %s392_s22, %s392_s22, %s393_s23  }
 0x12c   :  { %389 = dma.done.wait [#allocation4], 256  }
 0x12d   :  { %390 = vsyncadd [#allocation4], 4294967040 }
 0x12e   :  { %249 = vsyncpa [#allocation3], 1 }
 0x12f   :  { %250 = vsyncpa [#allocation6], 1 }
 0x130   :  { %251 = vsyncpa [#allocation4], 1 }

</bundles_post_ra>
